<compile_context>
chip_gen: v7x
topology: tpu7x:2x2x1
jax: 0.10.0
libtpu: 0.0.40
codegen_flags: <defaults>
</compile_context>

<pallas_src>
import functools

import jax
import jax.numpy as jnp
from jax.experimental import pallas as pl
from jax.experimental.pallas import tpu as pltpu


def _mixer_kernel(x_ref, w_ref, b_ref, o_ref, *, mxu_dtype):
    # x_ref: (ROWS, LANES)   w_ref: (ROWS, ROWS) block-diag kron(I_g, W)
    # b_ref: (ROWS, 1) f32   o_ref: (ROWS, LANES)
    x = x_ref[...]
    xm = x if mxu_dtype is None else x.astype(mxu_dtype)
    acc = jnp.dot(w_ref[...], xm, preferred_element_type=jnp.float32)
    # Fused bias + residual epilogue, elementwise math in f32.
    o_ref[...] = (acc + b_ref[...] + x.astype(jnp.float32)).astype(o_ref.dtype)


def _tpu_defaults():
    """(MXU contraction depth, per-x-block byte budget) for the local TPU gen."""
    kind = ""
    try:
        kind = jax.devices()[0].device_kind.lower()
    except Exception:
        pass
    if "v5" in kind:
        # 16 MiB default scoped VMEM: 2x(x + out) at 2.5 MiB ~= 10 MiB + weight.
        return 128, (5 * 1024 * 1024) // 2
    if "v6" in kind:
        # 32 MiB default scoped VMEM; bigger blocks amortize ~0.35us/step overhead.
        return 256, 5 * 1024 * 1024
    if "v7" in kind or "7x" in kind:
        # 64 MiB physical (32 MiB scoped) VMEM: keep double-buffered set <= ~20 MiB.
        return 256, 4 * 1024 * 1024
    return 128, 2 * 1024 * 1024


def _pick_row_block(ns_total, c, itemsize, mxu_k):
    """Rows per block: g*c with g | ns_total, g*c capped at the MXU contraction
    depth (no all-zero kron tiles), and a multiple of the dtype sublane quantum
    unless it equals the full second-minor dim (always legal)."""
    total = ns_total * c
    sub = max(8, 32 // max(1, itemsize))            # 8 f32 / 16 bf16 / 32 int8
    g_cap = 1 if c >= mxu_k else max(1, -(-mxu_k // c))   # ceil(mxu_k / c)
    g_cap = min(g_cap, ns_total)
    for g in range(g_cap, 0, -1):
        rows = g * c
        if ns_total % g == 0 and (rows % sub == 0 or rows == total):
            return rows
    return total                                    # full dim fallback: always legal


def _pick_hw_block(hw_p, rows, itemsize, block_bytes):
    """Lanes per block: multiple of 128 (or == hw_p), x-block capped near budget."""
    budget = max(1, block_bytes // max(1, rows * itemsize))
    budget = max(128, (budget // 128) * 128)
    return hw_p if hw_p <= budget else budget


def _ensure_multi_step(total_rows, rows, hw_p, lanes, c, sub):
    """Guarantee >= 2 grid steps on a parallel axis (keeps both v7x TCs busy and
    lets the pipeline overlap DMA with compute)."""
    steps = (total_rows // rows) * (-(-hw_p // lanes))
    if steps >= 2:
        return rows, lanes
    if hw_p >= 256:                                  # split the lane axis, 128-aligned
        return rows, max(128, ((hw_p // 2) // 128) * 128)
    g = rows // c
    for g2 in range(g - 1, 0, -1):                   # else split the row axis
        r2 = g2 * c
        if g % g2 == 0 and r2 % sub == 0:
            return r2, lanes
    return rows, lanes                               # degenerate tiny problem: keep (1,1)


@functools.partial(
    jax.jit,
    static_argnames=("num_segments", "fast_matmul", "alias_input",
                     "block_bytes", "mxu_k"))
def residual_channel_mixer_iii(x, weight, bias, *, num_segments=3,
                               fast_matmul=True, alias_input=None,
                               block_bytes=None, mxu_k=None):
    """Residual(ChannelMixerIII): y = shared per-segment 1x1 conv(x) + bias + x.

    x: (N, hdim, H, W); weight: (c, c, 1, 1); bias: (c,); hdim = num_segments*c.
    """
    n, hdim, h, w = x.shape
    assert hdim % num_segments == 0
    c = hdim // num_segments
    assert weight.shape == (c, c, 1, 1) and bias.shape == (c,)

    mxu_k_d, block_bytes_d = _tpu_defaults()
    if mxu_k is None:
        mxu_k = mxu_k_d
    if block_bytes is None:
        block_bytes = block_bytes_d

    itemsize = jnp.dtype(x.dtype).itemsize
    sub = max(8, 32 // max(1, itemsize))

    hw = h * w
    total_rows = n * hdim
    x2 = x.reshape(total_rows, hw)                  # free view of NCHW

    # Pad the lane (spatial) axis once in HBM to a multiple of 128 so every
    # store in the kernel is an unmasked, lane-dense vst (sliced off after).
    hw_p = ((hw + 127) // 128) * 128
    pad = hw_p - hw
    if pad:
        x2 = jnp.pad(x2, ((0, 0), (0, pad)))

    rows = _pick_row_block(n * num_segments, c, itemsize, mxu_k)
    lanes = _pick_hw_block(hw_p, rows, itemsize, block_bytes)
    rows, lanes = _ensure_multi_step(total_rows, rows, hw_p, lanes, c, sub)
    assert total_rows % rows == 0

    # Block-diagonal weight: one MXU matmul covers g segments; rows <= MXU depth.
    g = rows // c
    w2 = weight[:, :, 0, 0]                                           # (out, in)
    mxu_dtype = jnp.bfloat16 if (fast_matmul and x.dtype != jnp.bfloat16) else None
    w_dtype = jnp.bfloat16 if fast_matmul else x.dtype
    w_blk = jnp.kron(jnp.eye(g, dtype=w2.dtype), w2).astype(w_dtype)  # (rows, rows)
    b_blk = jnp.tile(bias, g).reshape(rows, 1).astype(jnp.float32)    # (rows, 1)

    grid = (total_rows // rows, pl.cdiv(hw_p, lanes))  # row axis divides exactly

    # Alias output onto the x buffer when padding created a fresh intermediate
    # (free HBM-footprint halving); callers that donate x can force it.
    if alias_input is None:
        alias_input = pad > 0
    alias_kwargs = dict(input_output_aliases={0: 0}) if alias_input else {}

    kernel = functools.partial(_mixer_kernel, mxu_dtype=mxu_dtype)

    out = pl.pallas_call(
        kernel,
        out_shape=jax.ShapeDtypeStruct((total_rows, hw_p), x.dtype),
        grid_spec=pltpu.PrefetchScalarGridSpec(
            num_scalar_prefetch=0,
            grid=grid,
            in_specs=[
                pl.BlockSpec((rows, lanes), lambda i, j: (i, j)),
                pl.BlockSpec((rows, rows), lambda i, j: (0, 0)),   # resident weight
                pl.BlockSpec((rows, 1), lambda i, j: (0, 0)),      # resident bias
            ],
            out_specs=pl.BlockSpec((rows, lanes), lambda i, j: (i, j)),
        ),
        compiler_params=pltpu.CompilerParams(
            dimension_semantics=("parallel", "parallel")),
        **alias_kwargs,
    )(x2, w_blk, b_blk)

    if pad:
        out = out[:, :hw]
    return out.reshape(n, hdim, h, w)               # free view back to NCHW


def _reference(x, weight, bias, num_segments, *, bf16_operands=False):
    n, hdim, h, w = x.shape
    c = hdim // num_segments
    w2 = weight[:, :, 0, 0]
    xs = x.reshape(n, num_segments, c, h, w)
    if bf16_operands:
        # Matches the kernel's fast path: bf16 operands, f32 accumulation.
        ys = jnp.einsum("oi,nsihw->nsohw",
                        w2.astype(jnp.bfloat16), xs.astype(jnp.bfloat16),
                        preferred_element_type=jnp.float32)
    else:
        ys = jnp.einsum("oi,nsihw->nsohw", w2, xs,
                        precision=jax.lax.Precision.HIGHEST)
    ys = ys + bias[None, None, :, None, None]
    return ys.reshape(n, hdim, h, w) + x            # Residual: fn(x) + x


if __name__ == "__main__":
    key = jax.random.PRNGKey(0)

    cases = [
        dict(n=2, s=3, c=4, hh=16, ww=16),    # tiny segment width; lane-split grid
        dict(n=2, s=3, c=64, hh=16, ww=16),   # wider channels; multi-row-block grid
        dict(n=2, s=3, c=8, hh=14, ww=14),    # H*W=196: lane padding + output alias
    ]
    for cfg in cases:
        key, kx, kwt, kb = jax.random.split(key, 4)
        n, s, c, hh, ww = cfg["n"], cfg["s"], cfg["c"], cfg["hh"], cfg["ww"]
        hdim = s * c
        x = jax.random.normal(kx, (n, hdim, hh, ww), dtype=jnp.float32)
        weight = jax.random.normal(kwt, (c, c, 1, 1), dtype=jnp.float32) * 0.1
        bias = jax.random.normal(kb, (c,), dtype=jnp.float32) * 0.1

        # Default fast path: bf16 MXU operands, f32 accumulation + f32 epilogue.
        y_fast = jax.block_until_ready(
            residual_channel_mixer_iii(x, weight, bias, num_segments=s))
        # f32-operand fallback path.
        y_f32 = jax.block_until_ready(
            residual_channel_mixer_iii(x, weight, bias, num_segments=s,
                                       fast_matmul=False))

        ref_hi = _reference(x, weight, bias, s)
        ref_bf = _reference(x, weight, bias, s, bf16_operands=True)

        assert y_fast.shape == (n, hdim, hh, ww)
        # Structural correctness vs an operand-precision-matched reference (tight).
        assert jnp.allclose(y_fast, ref_bf, atol=1e-4, rtol=1e-4), "fast path mismatch"
        # Accuracy envelope of the bf16-operand fast path vs exact f32 math (loose).
        assert jnp.allclose(y_fast, ref_hi, atol=1e-1, rtol=1e-1), "fast path drift"
        # f32-operand path: dot precision is backend-resolved, so moderate bound.
        assert jnp.allclose(y_f32, ref_hi, atol=1e-1, rtol=1e-1), "f32 path mismatch"

    print("KERNEL_OK")
</pallas_src>

<mosaic_0001>
module attributes {stable_mosaic.version = 11 : i64} {
  func.func @_mixer_kernel(%arg0: i32, %arg1: i32, %arg2: memref<24x128xf32, #tpu.memory_space<vmem>>, %arg3: memref<24x24xbf16, #tpu.memory_space<vmem>>, %arg4: memref<24x1xf32, #tpu.memory_space<vmem>>, %arg5: memref<24x128xf32, #tpu.memory_space<vmem>>) attributes {dimension_semantics = [#tpu.dimension_semantics<parallel>, #tpu.dimension_semantics<parallel>], iteration_bounds = array<i64: 1, 2>, scalar_prefetch = 0 : i64, scratch_operands = 0 : i64, tpu.core_type = #tpu.core_type<tc>, window_params = [{transform_indices = @transform_0, window_bounds = array<i64: 24, 128>}, {pipeline_mode = #tpu.pipeline_mode<synchronous>, transform_indices = @transform_1, window_bounds = array<i64: 24, 24>}, {pipeline_mode = #tpu.pipeline_mode<synchronous>, transform_indices = @transform_2, window_bounds = array<i64: 24, 1>}, {transform_indices = @transform_3, window_bounds = array<i64: 24, 128>}]} {
    %c0 = arith.constant 0 : index
    %c0_0 = arith.constant 0 : index
    %0 = vector.load %arg2[%c0, %c0_0] : memref<24x128xf32, #tpu.memory_space<vmem>>, vector<24x128xf32>
    %1 = arith.truncf %0 : vector<24x128xf32> to vector<24x128xbf16>
    %c0_1 = arith.constant 0 : index
    %c0_2 = arith.constant 0 : index
    %2 = vector.load %arg3[%c0_1, %c0_2] : memref<24x24xbf16, #tpu.memory_space<vmem>>, vector<24x24xbf16>
    %cst = arith.constant dense<0.000000e+00> : vector<24x128xf32>
    %3 = tpu.matmul %2, %1, %cst {dimension_numbers = #tpu.dot_dimension_numbers<[1], [0], [0], [1], [0, 0, 1, 1], [], []>} : vector<24x24xbf16>, vector<24x128xbf16>, vector<24x128xf32> -> vector<24x128xf32>
    %c0_3 = arith.constant 0 : index
    %c0_4 = arith.constant 0 : index
    %4 = vector.load %arg4[%c0_3, %c0_4] : memref<24x1xf32, #tpu.memory_space<vmem>>, vector<24x1xf32>
    %5 = vector.broadcast %4 : vector<24x1xf32> to vector<24x128xf32>
    %6 = arith.addf %3, %5 : vector<24x128xf32>
    %7 = arith.addf %6, %0 : vector<24x128xf32>
    %c0_5 = arith.constant 0 : index
    %c0_6 = arith.constant 0 : index
    %8 = vector.load %arg5[%c0_5, %c0_6] : memref<24x128xf32, #tpu.memory_space<vmem>>, vector<24x128xf32>
    tpu.vector_store %arg5[%c0_5, %c0_6], %7 {strides = array<i32>} : memref<24x128xf32, #tpu.memory_space<vmem>>, vector<24x128xf32>,
    return
  }
  func.func @transform_0(%arg0: i32, %arg1: i32) -> (i32, i32) {
    %c0_i32 = arith.constant 0 : i32
    return %arg0, %arg1 : i32, i32
  }
  func.func @transform_1(%arg0: i32, %arg1: i32) -> (i32, i32) {
    %c0_i32 = arith.constant 0 : i32
    %c0_i32_0 = arith.constant 0 : i32
    %c0_i32_1 = arith.constant 0 : i32
    return %c0_i32, %c0_i32_0 : i32, i32
  }
  func.func @transform_2(%arg0: i32, %arg1: i32) -> (i32, i32) {
    %c0_i32 = arith.constant 0 : i32
    %c0_i32_0 = arith.constant 0 : i32
    %c0_i32_1 = arith.constant 0 : i32
    return %c0_i32, %c0_i32_0 : i32, i32
  }
  func.func @transform_3(%arg0: i32, %arg1: i32) -> (i32, i32) {
    %c0_i32 = arith.constant 0 : i32
    return %arg0, %arg1 : i32, i32
  }
}

</mosaic_0001>

<bundles_post_ra>
// kernel: tile.8
= control target key start
LH: loop header
LB: loop body
LE: loop exit
PB: predicated region body
PF: predicated region fallthrough
CT: control target
= control target key end

     0   :  { %s22_s0 = inlined_call_operand.vmem [shape: f32[4], index: 0, kind: input, shape index: {}]   ;;  %s23_s1 = inlined_call_operand.vmem [shape: f32[6,4], index: 1, kind: output, shape index: {}]  }
   0x1   :  { %v4_v0 = vld [vmem:[%s22_s0] ss:$0 sm:$0xff] }
   0x2   :  { %5 = vst [vmem:[%s23_s1] sm:$0xff] %v4_v0 }

// kernel: tile.0
= control target key start
LH: loop header
LB: loop body
LE: loop exit
PB: predicated region body
PF: predicated region fallthrough
CT: control target
= control target key end

     0   :  { %vm3_vm0 = vcmask 7168   ;;  %s29_s12 = smov 127   ;;  %s30_s13 = smov 125   ;;  %s70_s0 = inlined_call_operand.vmem [shape: f32[6,4], index: 0, kind: input, shape index: {}]   ;;  %s71_s1 = inlined_call_operand.vmem [shape: f32[24,1], index: 1, kind: output, shape index: {}]  }
   0x1   :  { %v5_v0 = vld [vmem:[%s70_s0] sm:$0x3f]  }
   0x2   :  { %v17_v1 = vld [vmem:[%s70_s0] sm:$0x3f]   ;;  %6 = vrot.lane.b32.xlu0 %v5_v0, %s29_s12 }
   0x3   :  { %v2_v2 = vld [vmem:[%s70_s0] sm:$0x3f]   ;;  %18 = vrot.lane.b32.xlu1 %v17_v1, %s30_s13 }
   0x4   :  { %4 = vst.msk [vmem:[%s71_s1] ss:$4 sm:$0x3f] %vm3_vm0, %v2_v2   ;;  %v11_v3 = vld [vmem:[%s70_s0] sm:$0x3f]   ;;  %s31_s0 = smov 126  }
   0x6   :  { %12 = vrot.lane.b32.xlu0 %v11_v3, %s31_s0 }
  0x74   :  { %v7_v4 = vpop.permute.xlu0 %6  }
  0x75   :  { %v19_v5 = vpop.permute.xlu1 %18   ;;  %23 = vst.msk [vmem:[%s71_s1 + $0x1] ss:$4 sm:$0x3f] %vm3_vm0, %v7_v4  }
  0x76   :  { %25 = vst.msk [vmem:[%s71_s1 + $0x3] ss:$4 sm:$0x3f] %vm3_vm0, %v19_v5  }
  0x78   :  { %v13_v6 = vpop.permute.xlu0 %12  }
  0x79   :  { %24 = vst.msk [vmem:[%s71_s1 + $0x2] ss:$4 sm:$0x3f] %vm3_vm0, %v13_v6  }

// kernel: residual_channel_mixer_iii.1
= control target key start
LH: loop header
LB: loop body
LE: loop exit
PB: predicated region body
PF: predicated region fallthrough
CT: control target
= control target key end

     0   :  { %s583_s12 = smov 0   ;;  %s585_s13 = smov 0   ;;  %s676_s0 = inlined_call_operand.vmem [shape: f32[24,256], index: 0, kind: input, shape index: {}]   ;;  %s677_s1 = inlined_call_operand.vmem [shape: bf16[24,24], index: 1, kind: input, shape index: {}]   ;;  %s678_s2 = inlined_call_operand.vmem [shape: f32[24,1], index: 2, kind: input, shape index: {}]   ;;  %s679_s3 = inlined_call_operand.vmem [shape: f32[24,256], index: 3, kind: output, shape index: {}]  }
   0x1   :  { %s587_s14 = smov 0   ;;  %s589_s15 = smov 0  }
   0x2   :  { %s591_s16 = smov 0  }
   0x3 LB: > { %s22_s17 = sadd.s32 1, %s556_s15  ;;  %s449_s18 = sadd.s32 4294967295, %s560_s16   ;;  %s560_s16 = sphi %s591_s16, %s13_s16   ;;  %s556_s15 = sphi %s589_s15, %s684_s15   ;;  %s552_s14 = sphi %s587_s14, %s683_s14   ;;  %s548_s13 = sphi %s585_s13, %s682_s13   ;;  %s544_s12 = sphi %s583_s12, %s681_s12  }
   0x4   : > { %p23_p0 = scmp.ge.s32.totalorder %s22_s17, 2  ;;  %p41_p1 = scmp.ne.s32.totalorder %s548_s13, %s544_s12 }
   0x5   : > { %p42_p2 = scmp.eq.s32.totalorder %s560_s16, 0  ;;  %p115_p4 = scmp.eq.s32.totalorder %s449_s18, 1 }
   0x6   : > { %s686_s17 = smov (%p23_p0, %s22_s17), 0  ;;  %s34_s20 = sadd.s32 1, %s548_s13 }
   0x7   : > { %p43_p3 = por %p42_p2, %p41_p1  ;;  %s30_s19 = ssub.s32 %s556_s15, %s686_s17 }
   0x8   : > { %p32_p5 = scmp.eq.s32.totalorder %s30_s19, 0  ;;  %p618_p6 = por %p115_p4, %p41_p1 }
   0x9   : > { %p452_p7 = scmp.ge.s32.totalorder %s560_s16, 2 }
   0xa   : > { %s623_s22 = scalar_select %p32_p5, %s548_s13, %s34_s20  }
   0xb   : > { %143 = sbr.rel (%p452_p7) target bundleno = 25 (0x19), region = 24 }
  0x12   : > { %146 = sbr.rel (!%p43_p3) target bundleno = 25 (0x19), region = 28  ;;  %s148_s23 = sand.u32 (%p43_p3), 1, %s548_s13  }
  0x13   : > { %s453_s24 = sshll.u32 (%p43_p3), %s556_s15, 3  ;;  %s475_s25 = smul.u32 (%p43_p3), 24, %s148_s23 }
  0x14   : > { %s155_s28 = scalar_lea.vmem (%p43_p3), %s676_s0, %s453_s24 }
  0x15   : > { %v187_v0 = vld [vmem:[%s155_s28] sm:$0xff] (%p43_p3)  ;;  %v189_v1 = vld [vmem:[%s155_s28 + $0x10] sm:$0xff] (%p43_p3)  ;;  %s150_s29 = scalar_lea.vmem (%p43_p3), [#allocation2], %s475_s25 }
  0x16   : > { %v191_v2 = vld [vmem:[%s155_s28 + $0x20] sm:$0xff] (%p43_p3)  ;;  %188 = vst [vmem:[%s150_s29] sm:$0xff] (%p43_p3), %v187_v0  ;;  %190 = vst [vmem:[%s150_s29 + $0x8] sm:$0xff] (%p43_p3), %v189_v1 }
  0x17   : > { %192 = vst [vmem:[%s150_s29 + $0x10] sm:$0xff] (%p43_p3), %v191_v2 }
  0x19 PF: > { %p454_p8 = scmp.ge.s32.totalorder %s560_s16, 1  ;;  %p197_p9 = scmp.lt.s32.totalorder %s560_s16, 3 }
  0x1b   : > { %p198_p10 = pnand %p454_p8, %p197_p9 }
  0x1c   : > { %s204_s30 = sand.u32 (!%p198_p10), 1, %s544_s12   ;;  %v520_v3 = vld [vmem:[%s677_s1] sm:$0xff] (!%p198_p10)   ;;  %vm263_vm0 = vcmask (!%p198_p10), 195584   ;;  %v562_v4 = vmov (!%p198_p10), 0   ;;  %v238_v6 = vld [vmem:[%s678_s2 + $0x8] sm:$0xff] (!%p198_p10)  ;;  %v239_v7 = vld [vmem:[%s678_s2 + $0x10] sm:$0xff] (!%p198_p10) }
  0x1d   : > { %201 = sbr.rel (%p198_p10) target bundleno = 272 (0x110), region = 66  ;;  %518 = vset.pattern.permute.xlu0 (!%p198_p10), %v562_v4  ;;  %v237_v5 = vld [vmem:[%s678_s2] sm:$0xff] (!%p198_p10)  ;;  %519 = vset.pattern.permute.xlu1 (!%p198_p10), %v562_v4  ;;  %vm270_vm1 = vcmask (!%p198_p10), 1043456   ;;  %v521_v14 = vld [vmem:[%s677_s1 + $0x8] ss:$0 sps:$4 sm:$0xff] (!%p198_p10)  }
  0x1e   : > { %s634_s4 = smul.u32 (!%p198_p10), 24, %s204_s30  ;;  %470 = vmatprep.mubr.msk.bf16.mxu0 (!%p198_p10), %vm263_vm0, %v520_v3  ;;  %242 = vperm.xlu0 (!%p198_p10), %518, %v237_v5  }
  0x1f   : > { %252 = vperm.xlu1 (!%p198_p10), %519, %v239_v7  }
  0x20   : > { %s206_s18 = scalar_lea.vmem (!%p198_p10), [#allocation2], %s634_s4  ;;  %s225_s23 = scalar_lea.vmem (!%p198_p10), [#allocation3], %s634_s4 }
  0x21   : > { %v229_v8 = vld [vmem:[%s206_s18] sm:$0xff] (!%p198_p10)  ;;  %v230_v9 = vld [vmem:[%s206_s18 + $0x8] sm:$0xff] (!%p198_p10)  ;;  %v231_v10 = vld [vmem:[%s206_s18 + $0x10] sm:$0xff] (!%p198_p10) }
  0x22   : > { %v232_v11 = vpack.c.bf16 (!%p198_p10), %v230_v9, %v229_v8  ;;  %v233_v12 = vpack.c.bf16 (!%p198_p10), %v231_v10, %v231_v10  ;;  %247 = vperm.xlu0 (!%p198_p10), %518, %v238_v6  }
  0x24   : > { %466 = vmatprep.subr.bf16.mxu0 %v232_v11  ;;  %v272_v13 = vsel %vm270_vm1, %v233_v12, 0  ;;  %s459_s24 = sshll.u32 (%p618_p6), %s552_s14, 3 }
  0x25   : > { %467 = vmatpush3.bf16.msra.mxu0 %v232_v11  ;;  %s339_s27 = scalar_lea.vmem (%p618_p6), %s679_s3, %s459_s24 }
  0x26   : > { %474 = vmatprep.subr.msk.bf16.mxu0 %vm270_vm1, %v233_v12 }
  0x29   : > { %469 = vmatpush3.bf16.msra.mxu0 %v272_v13 }
  0x2c   : > { %471 = vmatmul.mubr.msk.bf16.vlgmr.msra.gmra.mrb[0].mxu0 %vm263_vm0, %v521_v14 }
  0x9d   : > { %v243_v15 = vpop.permute.xlu0 %242 }
  0x9e   : > { %v253_v16 = vpop.permute.xlu1 %252 }
  0xa1   : > { %v248_v22 = vpop.permute.xlu0 %247 }
  0xff   : > { %v472_v17 = vpop.f32.mrb[0].mxu0 }
 0x100   : > { %v317_v18 = vadd.f32 %v472_v17, %v253_v16  ;;  %v308_v19 = vpop.f32.mrb[1].mxu0 }
 0x101   : > { %v309_v20 = vadd.f32 %v308_v19, %v243_v15  ;;  %v473_v21 = vpop.f32.mrb[2].mxu0  ;;  %334 = sbr.rel (!%p618_p6) target bundleno = 272 (0x110), region = 74 }
 0x102   : > { %v324_v23 = vadd.f32 %v317_v18, %v231_v10  ;;  %v311_v24 = vpop.f32.mrb[3].mxu0 }
 0x103   : > { %v322_v25 = vadd.f32 %v309_v20, %v229_v8  ;;  %v312_v26 = vadd.f32 %v311_v24, %v248_v22 }
 0x104   : > { %327 = vst [vmem:[%s225_s23 + $0x10] sm:$0xff] %v324_v23 }
 0x105   : > { %325 = vst [vmem:[%s225_s23] sm:$0xff] %v322_v25  ;;  %v323_v27 = vadd.f32 %v312_v26, %v230_v9 }
 0x107   : > { %326 = vst [vmem:[%s225_s23 + $0x8] sm:$0xff] %v323_v27 }
 0x10b   : > { %v375_v30 = vld [vmem:[%s225_s23 + $0x10] sm:$0xff] }
 0x10c   : > { %v371_v28 = vld [vmem:[%s225_s23] sm:$0xff]  ;;  %376 = vst [vmem:[%s339_s27 + $0x20] sm:$0xff] %v375_v30 }
 0x10d   : > { %372 = vst [vmem:[%s339_s27] sm:$0xff] %v371_v28 }
 0x10e   : > { %v373_v29 = vld [vmem:[%s225_s23 + $0x8] sm:$0xff] }
 0x10f   : > { %374 = vst [vmem:[%s339_s27 + $0x10] sm:$0xff] %v373_v29 }
 0x110 PF: > { %s13_s16 = sadd.s32 1, %s560_s16   ;;  %s681_s12 = smov %s548_s13 }
 0x111   : > { %p10_p11 = scmp.ge.s32.totalorder %s13_s16, 4   ;;  %s682_s13 = smov %s623_s22 }
 0x112   : > { %s683_s14 = smov %s556_s15  ;;  %s684_s15 = smov %s686_s17 }
 0x113   :  { %12 = sbr.rel (!%p10_p11) target bundleno = 3 (0x3), region = 143 }

</bundles_post_ra>
